<compile_context>
chip_gen: v6e
topology: v6e:2x2x1
jax: 0.10.0
libtpu: 0.0.40
codegen_flags: <defaults>
</compile_context>

<pallas_src>
import functools

import jax
import jax.numpy as jnp
from jax import lax
from jax.experimental import pallas as pl
from jax.experimental.pallas import tpu as pltpu


def _round_up(x, m):
    return ((x + m - 1) // m) * m


def _cdiv(a, b):
    return -(-a // b)


# ---------------------------------------------------------------------------
# Per-generation knobs: MXU tile (fuse heuristic), scoped-VMEM limit, and
# whether the chip exposes two TensorCores to one Pallas grid.
# ---------------------------------------------------------------------------
@functools.lru_cache(maxsize=None)
def _tpu_config():
    try:
        kind = jax.devices()[0].device_kind.lower()
    except Exception:  # pragma: no cover - no device info available
        kind = ""
    mib = 1024 * 1024
    if "v7" in kind or "7x" in kind:
        # v7x: 2 TCs/chip but only 64 MiB physical VMEM -> leave headroom.
        return {"mxu": 256, "vmem_limit": 48 * mib, "two_cores": True}
    if "v6" in kind:
        return {"mxu": 256, "vmem_limit": 96 * mib, "two_cores": False}
    if "v5" in kind:
        return {"mxu": 128, "vmem_limit": 96 * mib, "two_cores": False}
    if "v4" in kind:
        # v4 megacore: two TensorCores behind one device.
        return {"mxu": 128, "vmem_limit": 96 * mib, "two_cores": True}
    # Unknown / older generation: conservative defaults, no vmem override.
    return {"mxu": 128, "vmem_limit": None, "two_cores": False}


# ---------------------------------------------------------------------------
# Tile pickers (VMEM-budget driven).
# ---------------------------------------------------------------------------
def _pick_row_tile(R, L_in, D, lp, itemsize, budget, fuse_all, two_cores):
    # Constant-operand footprint (counted double-buffered to stay safe even if
    # single-buffering of the weights is unavailable).
    if fuse_all:
        w_bytes = 2 * (L_in * lp * itemsize + lp * 4)
    else:
        w_bytes = 2 * (L_in * D * itemsize + D * 4 + D * lp * itemsize + lp * 4)
    avail = max(budget - w_bytes, 8 * 1024)
    # Per-row VMEM: double-buffered input + output tiles plus the f32
    # intermediates the kernel materializes.
    per_row = 2 * L_in * itemsize + 2 * lp * itemsize + 4 * lp
    if not fuse_all:
        per_row += 4 * D
    tm = max(8, min(1024, (avail // max(per_row, 1)) // 8 * 8))
    tm = min(tm, _round_up(R, 8))
    if two_cores and R > 8 and _cdiv(R, tm) < 2:
        # Split so both TensorCores get a tile of the "parallel" row axis.
        tm = _round_up(_cdiv(R, 2), 8)
    return tm


def _pick_chan_tile(B, C, L_in, L_pred, itemsize, budget, two_cores):
    w_bytes = 2 * (L_pred * L_in * itemsize + L_pred * 4)
    avail = max(budget - w_bytes, 8 * 1024)
    per_chan = 2 * L_in * itemsize + 2 * L_pred * itemsize + 4 * L_pred
    tc = max(128, min(2048, (avail // max(per_chan, 1)) // 128 * 128))
    tc = min(tc, _round_up(C, 128))
    if two_cores and B == 1 and C > 128 and _cdiv(C, tc) < 2:
        tc = _round_up(_cdiv(C, 2), 128)
    return tc


# ---------------------------------------------------------------------------
# Kernels.
# ---------------------------------------------------------------------------
def _fused_rows_kernel(x_ref, w_ref, b_ref, o_ref):
    # y = x @ (Wd Wk We)^T + (Wd Wk be + bd)
    #   x_ref: (TM, L_in)   w_ref: (L_in, Lp)   b_ref: (1, Lp) f32
    y = jnp.dot(x_ref[...], w_ref[...],
                preferred_element_type=jnp.float32) + b_ref[...]
    o_ref[...] = y.astype(o_ref.dtype)


def _two_stage_rows_kernel(x_ref, w1_ref, b1_ref, w2_ref, b2_ref, o_ref):
    # h = x @ (Wk We)^T + Wk be ; y = h @ Wd^T + bd
    #   x_ref: (TM, L_in)  w1: (L_in, D)  b1: (1, D) f32
    #   w2: (D, Lp)        b2: (1, Lp) f32
    h = jnp.dot(x_ref[...], w1_ref[...],
                preferred_element_type=jnp.float32) + b1_ref[...]
    y = jnp.dot(h.astype(w2_ref.dtype), w2_ref[...],
                preferred_element_type=jnp.float32) + b2_ref[...]
    o_ref[...] = y.astype(o_ref.dtype)


def _fused_chan_kernel(x_ref, w_ref, b_ref, o_ref):
    # Channels-on-lanes: out[b, :, c_tile] = W_full @ x[b, :, c_tile] + b_full
    #   x_ref: (1, L_in, TC)  w_ref: (L_pred, L_in)  b_ref: (L_pred, 1) f32
    y = jnp.dot(w_ref[...], x_ref[0],
                preferred_element_type=jnp.float32) + b_ref[...]
    o_ref[0] = y.astype(o_ref.dtype)


# ---------------------------------------------------------------------------
# Forward.
# ---------------------------------------------------------------------------
@functools.partial(jax.jit, static_argnames=("single_buffer_weights",))
def _forward(x, we, be, wk, wd, bd, *, single_buffer_weights=True):
    B, L_in, C = x.shape
    D = wk.shape[0]
    L_pred = wd.shape[0]
    f32 = jnp.float32
    hi = lax.Precision.HIGHEST
    isz = jnp.dtype(x.dtype).itemsize

    cfg = _tpu_config()
    mxu, vmem_limit, two_cores = cfg["mxu"], cfg["vmem_limit"], cfg["two_cores"]
    budget = int(0.6 * (vmem_limit if vmem_limit else 32 * 1024 * 1024))

    # ---- offline weight prep (one-time, outside the grid loop) ------------
    # Fold the Koopman operator into the encoder: h = (Wk We) x + Wk be.
    wek = jnp.dot(wk.astype(f32), we.astype(f32), precision=hi)   # (D, L_in)
    bek = jnp.dot(wk.astype(f32), be.astype(f32), precision=hi)   # (D,)

    # Lane padding of the output only when L_pred is wide enough that the
    # unmasked stores beat the extra HBM write bytes (v5e feedback).
    lane = 128
    lp = L_pred if (L_pred % lane == 0 or L_pred < 64) else _round_up(L_pred, lane)

    # Fused vs two-stage by MXU-pass count (work is quantized by the MXU tile
    # of this generation, not by raw MACs).
    passes_fused = _cdiv(L_in, mxu) * _cdiv(lp, mxu)
    passes_two = _cdiv(L_in, mxu) * _cdiv(D, mxu) + _cdiv(D, mxu) * _cdiv(lp, mxu)
    fuse_all = passes_fused <= passes_two

    def const_spec(shape):
        # Block index never changes -> single-buffer to halve weight VMEM.
        idx = lambda *_: (0,) * len(shape)
        if single_buffer_weights:
            return pl.BlockSpec(shape, idx, pipeline_mode=pl.Buffered(1))
        return pl.BlockSpec(shape, idx)

    if fuse_all:
        w_full = jnp.dot(wd.astype(f32), wek, precision=hi)       # (L_pred, L_in)
        b_full = jnp.dot(wd.astype(f32), bek, precision=hi) + bd.astype(f32)

    # ---- channels-on-lanes path: no wrapper transposes at all --------------
    if fuse_all and C >= 128:
        tc = _pick_chan_tile(B, C, L_in, L_pred, isz, budget, two_cores)
        ce = pl.CostEstimate(
            flops=2 * B * C * L_in * L_pred,
            transcendentals=0,
            bytes_accessed=(B * L_in * C + B * L_pred * C) * isz
                           + L_pred * L_in * isz + L_pred * 4)
        return pl.pallas_call(
            _fused_chan_kernel,
            out_shape=jax.ShapeDtypeStruct((B, L_pred, C), x.dtype),
            grid_spec=pltpu.PrefetchScalarGridSpec(
                num_scalar_prefetch=0,
                grid=(B, _cdiv(C, tc)),
                in_specs=[
                    pl.BlockSpec((1, L_in, tc), lambda b, c: (b, 0, c)),
                    const_spec((L_pred, L_in)),
                    const_spec((L_pred, 1)),
                ],
                out_specs=pl.BlockSpec((1, L_pred, tc), lambda b, c: (b, 0, c)),
            ),
            compiler_params=pltpu.CompilerParams(
                dimension_semantics=("parallel", "parallel"),
                vmem_limit_bytes=vmem_limit),
            cost_estimate=ce,
        )(x, w_full.astype(x.dtype), b_full.reshape(L_pred, 1))

    # ---- rows path: (B, L_in, C) -> (B*C, L_in) rows ------------------------
    # TODO(synk): a two-stage channels-on-lanes variant would also remove the
    # transposes for the (rare) large-C shapes where two-stage wins on MXU passes.
    rows = jnp.transpose(x, (0, 2, 1)).reshape(B * C, L_in)
    R = B * C
    tm = _pick_row_tile(R, L_in, D, lp, isz, budget, fuse_all, two_cores)
    grid = (_cdiv(R, tm),)   # ragged last block clipped by Pallas (no jnp.pad)
    compiler_params = pltpu.CompilerParams(
        dimension_semantics=("parallel",), vmem_limit_bytes=vmem_limit)

    if fuse_all:
        w_t = jnp.pad(w_full.T, ((0, 0), (0, lp - L_pred))).astype(x.dtype)
        b2 = jnp.pad(b_full, (0, lp - L_pred)).reshape(1, lp)
        ce = pl.CostEstimate(
            flops=2 * R * L_in * lp, transcendentals=0,
            bytes_accessed=R * L_in * isz + L_in * lp * isz + lp * 4
                           + R * lp * isz)
        out_rows = pl.pallas_call(
            _fused_rows_kernel,
            out_shape=jax.ShapeDtypeStruct((R, lp), x.dtype),
            grid_spec=pltpu.PrefetchScalarGridSpec(
                num_scalar_prefetch=0, grid=grid,
                in_specs=[pl.BlockSpec((tm, L_in), lambda i: (i, 0)),
                          const_spec((L_in, lp)),
                          const_spec((1, lp))],
                out_specs=pl.BlockSpec((tm, lp), lambda i: (i, 0))),
            compiler_params=compiler_params,
            cost_estimate=ce,
        )(rows, w_t, b2)
    else:
        wek_t = wek.T.astype(x.dtype)                              # (L_in, D)
        b1 = bek.reshape(1, D)                                     # f32
        wd_t = jnp.pad(wd.astype(f32).T,
                       ((0, 0), (0, lp - L_pred))).astype(x.dtype) # (D, lp)
        b2 = jnp.pad(bd.astype(f32), (0, lp - L_pred)).reshape(1, lp)
        ce = pl.CostEstimate(
            flops=2 * R * L_in * D + 2 * R * D * lp, transcendentals=0,
            bytes_accessed=R * L_in * isz + L_in * D * isz + D * lp * isz
                           + (D + lp) * 4 + R * lp * isz)
        out_rows = pl.pallas_call(
            _two_stage_rows_kernel,
            out_shape=jax.ShapeDtypeStruct((R, lp), x.dtype),
            grid_spec=pltpu.PrefetchScalarGridSpec(
                num_scalar_prefetch=0, grid=grid,
                in_specs=[pl.BlockSpec((tm, L_in), lambda i: (i, 0)),
                          const_spec((L_in, D)),
                          const_spec((1, D)),
                          const_spec((D, lp)),
                          const_spec((1, lp))],
                out_specs=pl.BlockSpec((tm, lp), lambda i: (i, 0))),
            compiler_params=compiler_params,
            cost_estimate=ce,
        )(rows, wek_t, b1, wd_t, b2)

    out_rows = out_rows[:, :L_pred]
    return jnp.transpose(out_rows.reshape(B, C, L_pred), (0, 2, 1))


_WEIGHTS_SINGLE_BUFFERED = True   # flipped if this jax build rejects Buffered(1)


def time_inv_kp_forward(x, we, be, wk, wd, bd):
    """x: (B, L_in, C) -> (B, L_pred, C)."""
    global _WEIGHTS_SINGLE_BUFFERED
    if _WEIGHTS_SINGLE_BUFFERED:
        try:
            return _forward(x, we, be, wk, wd, bd, single_buffer_weights=True)
        except Exception:
            # Feature-detect: fall back to default double-buffered weights.
            _WEIGHTS_SINGLE_BUFFERED = False
    return _forward(x, we, be, wk, wd, bd, single_buffer_weights=False)


# ---------------------------------------------------------------------------
# Parameters + reference.
# ---------------------------------------------------------------------------
def make_params(key, input_len, pred_len, dynamic_dim, dtype=jnp.float32):
    """Deterministic synthetic parameters mirroring the module's __init__."""
    k_enc_w, k_enc_b, k_kinit, k_dec_w, k_dec_b = jax.random.split(key, 5)

    we = (jax.random.normal(k_enc_w, (dynamic_dim, input_len), dtype)
          / jnp.sqrt(jnp.asarray(input_len, dtype)))
    be = jax.random.normal(k_enc_b, (dynamic_dim,), dtype) * 0.01

    k_init = jax.random.normal(k_kinit, (dynamic_dim, dynamic_dim), jnp.float32)
    u, _, vh = jnp.linalg.svd(k_init, full_matrices=False)
    wk = (u @ vh).astype(dtype)

    wd = (jax.random.normal(k_dec_w, (pred_len, dynamic_dim), dtype)
          / jnp.sqrt(jnp.asarray(dynamic_dim, dtype)))
    bd = jax.random.normal(k_dec_b, (pred_len,), dtype) * 0.01
    return we, be, wk, wd, bd


def reference_forward(x, we, be, wk, wd, bd):
    """Pure-JAX reference of the PyTorch forward (unfused)."""
    with jax.default_matmul_precision("float32"):
        res = jnp.transpose(x, (0, 2, 1))            # (B, C, L_in)
        res = res @ we.T + be                        # encoder
        res = res @ wk.T                             # K (no bias)
        res = res @ wd.T + bd                        # decoder
        return jnp.transpose(res, (0, 2, 1))         # (B, L_pred, C)


if __name__ == "__main__":
    key = jax.random.PRNGKey(0)
    keys = jax.random.split(key, 8)

    def check(B, L_in, C, L_pred, D, kp, kx, dtype=jnp.float32,
              atol=1e-3, rtol=1e-3):
        x = jax.random.normal(kx, (B, L_in, C), dtype)
        we, be, wk, wd, bd = make_params(kp, L_in, L_pred, D, dtype)
        out = jax.block_until_ready(time_inv_kp_forward(x, we, be, wk, wd, bd))
        ref = reference_forward(
            x.astype(jnp.float32),
            *(p.astype(jnp.float32) for p in (we, be, wk, wd, bd)))
        assert out.shape == (B, L_pred, C), out.shape
        err = float(jnp.max(jnp.abs(out.astype(jnp.float32) - ref)))
        assert jnp.allclose(out.astype(jnp.float32), ref, atol=atol, rtol=rtol), err

    # rows path, fused single matmul (large and small D both fuse now)
    check(2, 16, 4, 24, 32, keys[0], keys[1])
    check(2, 16, 4, 24, 8, keys[0], keys[2])
    # rows path, two-stage (L_in / L_pred exceed the MXU tile, small D)
    check(2, 520, 4, 520, 16, keys[3], keys[4])
    # channels-on-lanes path (C >= 128: no wrapper transposes)
    check(2, 16, 256, 24, 32, keys[5], keys[6])
    # bf16 tolerance check (weight folding + output rounding in bf16)
    check(2, 16, 4, 24, 32, keys[0], keys[7], dtype=jnp.bfloat16,
          atol=1e-1, rtol=1e-1)

    print("KERNEL_OK")
</pallas_src>

<mosaic_0001>
module attributes {stable_mosaic.version = 11 : i64} {
  func.func @_fused_rows_kernel(%arg0: i32, %arg1: memref<8x16xf32, #tpu.memory_space<vmem>>, %arg2: memref<16x24xf32, #tpu.memory_space<vmem>>, %arg3: memref<1x24xf32, #tpu.memory_space<vmem>>, %arg4: memref<8x24xf32, #tpu.memory_space<vmem>>) attributes {dimension_semantics = [#tpu.dimension_semantics<parallel>], iteration_bounds = array<i64: 1>, scalar_prefetch = 0 : i64, scratch_operands = 0 : i64, tpu.core_type = #tpu.core_type<tc>, window_params = [{transform_indices = @transform_0, window_bounds = array<i64: 8, 16>}, {pipeline_mode = #tpu.pipeline_mode<synchronous>, transform_indices = @transform_1, window_bounds = array<i64: 16, 24>}, {pipeline_mode = #tpu.pipeline_mode<synchronous>, transform_indices = @transform_2, window_bounds = array<i64: 1, 24>}, {transform_indices = @transform_3, window_bounds = array<i64: 8, 24>}]} {
    %c0 = arith.constant 0 : index
    %c0_0 = arith.constant 0 : index
    %0 = vector.load %arg1[%c0, %c0_0] : memref<8x16xf32, #tpu.memory_space<vmem>>, vector<8x16xf32>
    %c0_1 = arith.constant 0 : index
    %c0_2 = arith.constant 0 : index
    %1 = vector.load %arg2[%c0_1, %c0_2] : memref<16x24xf32, #tpu.memory_space<vmem>>, vector<16x24xf32>
    %cst = arith.constant dense<0.000000e+00> : vector<8x24xf32>
    %2 = tpu.matmul %0, %1, %cst {dimension_numbers = #tpu.dot_dimension_numbers<[1], [0], [0], [1], [0, 0, 1, 1], [], []>} : vector<8x16xf32>, vector<16x24xf32>, vector<8x24xf32> -> vector<8x24xf32>
    %c0_3 = arith.constant 0 : index
    %c0_4 = arith.constant 0 : index
    %3 = vector.load %arg3[%c0_3, %c0_4] : memref<1x24xf32, #tpu.memory_space<vmem>>, vector<1x24xf32>
    %4 = vector.broadcast %3 : vector<1x24xf32> to vector<8x24xf32>
    %5 = arith.addf %2, %4 : vector<8x24xf32>
    %c0_5 = arith.constant 0 : index
    %c0_6 = arith.constant 0 : index
    %6 = vector.load %arg4[%c0_5, %c0_6] : memref<8x24xf32, #tpu.memory_space<vmem>>, vector<8x24xf32>
    tpu.vector_store %arg4[%c0_5, %c0_6], %5 {strides = array<i32>} : memref<8x24xf32, #tpu.memory_space<vmem>>, vector<8x24xf32>,
    return
  }
  func.func @transform_0(%arg0: i32) -> (i32, i32) {
    %c0_i32 = arith.constant 0 : i32
    %c0_i32_0 = arith.constant 0 : i32
    return %arg0, %c0_i32 : i32, i32
  }
  func.func @transform_1(%arg0: i32) -> (i32, i32) {
    %c0_i32 = arith.constant 0 : i32
    %c0_i32_0 = arith.constant 0 : i32
    %c0_i32_1 = arith.constant 0 : i32
    return %c0_i32, %c0_i32_0 : i32, i32
  }
  func.func @transform_2(%arg0: i32) -> (i32, i32) {
    %c0_i32 = arith.constant 0 : i32
    %c0_i32_0 = arith.constant 0 : i32
    %c0_i32_1 = arith.constant 0 : i32
    return %c0_i32, %c0_i32_0 : i32, i32
  }
  func.func @transform_3(%arg0: i32) -> (i32, i32) {
    %c0_i32 = arith.constant 0 : i32
    %c0_i32_0 = arith.constant 0 : i32
    return %arg0, %c0_i32 : i32, i32
  }
}

module attributes {stable_mosaic.version = 11 : i64} {
  func.func @_fused_rows_kernel(%arg0: i32, %arg1: memref<8x16xf32, #tpu.memory_space<vmem>>, %arg2: memref<16x24xf32, #tpu.memory_space<vmem>>, %arg3: memref<1x24xf32, #tpu.memory_space<vmem>>, %arg4: memref<8x24xf32, #tpu.memory_space<vmem>>) attributes {dimension_semantics = [#tpu.dimension_semantics<parallel>], iteration_bounds = array<i64: 1>, scalar_prefetch = 0 : i64, scratch_operands = 0 : i64, tpu.core_type = #tpu.core_type<tc>, window_params = [{transform_indices = @transform_0, window_bounds = array<i64: 8, 16>}, {pipeline_mode = #tpu.pipeline_mode<synchronous>, transform_indices = @transform_1, window_bounds = array<i64: 16, 24>}, {pipeline_mode = #tpu.pipeline_mode<synchronous>, transform_indices = @transform_2, window_bounds = array<i64: 1, 24>}, {transform_indices = @transform_3, window_bounds = array<i64: 8, 24>}]} {
    %c0 = arith.constant 0 : index
    %c0_0 = arith.constant 0 : index
    %0 = vector.load %arg1[%c0, %c0_0] : memref<8x16xf32, #tpu.memory_space<vmem>>, vector<8x16xf32>
    %c0_1 = arith.constant 0 : index
    %c0_2 = arith.constant 0 : index
    %1 = vector.load %arg2[%c0_1, %c0_2] : memref<16x24xf32, #tpu.memory_space<vmem>>, vector<16x24xf32>
    %cst = arith.constant dense<0.000000e+00> : vector<8x24xf32>
    %2 = tpu.matmul %0, %1, %cst {dimension_numbers = #tpu.dot_dimension_numbers<[1], [0], [0], [1], [0, 0, 1, 1], [], []>} : vector<8x16xf32>, vector<16x24xf32>, vector<8x24xf32> -> vector<8x24xf32>
    %c0_3 = arith.constant 0 : index
    %c0_4 = arith.constant 0 : index
    %3 = vector.load %arg3[%c0_3, %c0_4] : memref<1x24xf32, #tpu.memory_space<vmem>>, vector<1x24xf32>
    %4 = vector.broadcast %3 : vector<1x24xf32> to vector<8x24xf32>
    %5 = arith.addf %2, %4 : vector<8x24xf32>
    %c0_5 = arith.constant 0 : index
    %c0_6 = arith.constant 0 : index
    %6 = vector.load %arg4[%c0_5, %c0_6] : memref<8x24xf32, #tpu.memory_space<vmem>>, vector<8x24xf32>
    tpu.vector_store %arg4[%c0_5, %c0_6], %5 {strides = array<i32>} : memref<8x24xf32, #tpu.memory_space<vmem>>, vector<8x24xf32>,
    return
  }
  func.func @transform_0(%arg0: i32) -> (i32, i32) {
    %c0_i32 = arith.constant 0 : i32
    %c0_i32_0 = arith.constant 0 : i32
    return %arg0, %c0_i32 : i32, i32
  }
  func.func @transform_1(%arg0: i32) -> (i32, i32) {
    %c0_i32 = arith.constant 0 : i32
    %c0_i32_0 = arith.constant 0 : i32
    %c0_i32_1 = arith.constant 0 : i32
    return %c0_i32, %c0_i32_0 : i32, i32
  }
  func.func @transform_2(%arg0: i32) -> (i32, i32) {
    %c0_i32 = arith.constant 0 : i32
    %c0_i32_0 = arith.constant 0 : i32
    %c0_i32_1 = arith.constant 0 : i32
    return %c0_i32, %c0_i32_0 : i32, i32
  }
  func.func @transform_3(%arg0: i32) -> (i32, i32) {
    %c0_i32 = arith.constant 0 : i32
    %c0_i32_0 = arith.constant 0 : i32
    return %arg0, %c0_i32 : i32, i32
  }
}

</mosaic_0001>

<bundles_post_ra>
// kernel: _forward.1
= control target key start
LH: loop header
LB: loop body
LE: loop exit
PB: predicated region body
PF: predicated region fallthrough
CT: control target
= control target key end

     0   :  { %v152_v1 = vmov 0.0   ;;  %vm153_vm0 = vmmov 0   ;;  %s190_s0 = inlined_call_operand.vmem [shape: f32[8,16], index: 0, kind: input, shape index: {}]   ;;  %s191_s1 = inlined_call_operand.vmem [shape: f32[16,24], index: 1, kind: input, shape index: {}]   ;;  %s192_s2 = inlined_call_operand.vmem [shape: f32[1,24], index: 2, kind: input, shape index: {}]   ;;  %s193_s3 = inlined_call_operand.hbm [shape: f32[8,24], index: 3, kind: output, shape index: {}]  }
   0x1   :  { %v17_v0 = vld [vmem:[%s191_s1 + $0x8] sm:$0xff]  ;;  %120 = vmatprep.subr.mxu0 %v152_v1  ;;  %v16_v2 = vld [vmem:[%s191_s1] sm:$0xff]  ;;  %124 = vmatprep.mubr.msk.f32.mxu0 %vm153_vm0, %v152_v1 }
   0x2   :  { %8 = vsyncpa [#allocation3], 0  ;;  %121 = vmatpush3.msra.mxu0 %v17_v0  ;;  %v15_v3 = vld [vmem:[%s190_s0] sm:$0xff]  ;;  %vm25_vm1 = vcmask 130048   ;;  %s154_s20 = smov [#allocation2]   ;;  %vm99_vm2 = vcmask 195584  }
   0x3   :  { %122 = vmatprep.subr.mxu0 %v152_v1  ;;  %v115_v4 = vld [vmem:[%s192_s2] ss:$0 sm:$0xff]  ;;  %s107_s21 = sshll.u32 %s154_s20, 4  ;;  %s108_s21 = int_to_ptr.vmem [resolvable:$true] %s107_s21 }
   0x4   :  { %123 = vmatpush3.msra.mxu0 %v16_v2  ;;  %s130_s1 = scalar_lea.vmem %s108_s21, 128  ;;  %p135_p1 = scmp.lt.s32.totalorder %s108_s21, %s108_s21 }
   0x5   :  { %125 = vmatmul.mubr.msk.f32.vlgmr.msra.gmra.mxu0 %vm25_vm1, %v15_v3  ;;  %p131_p0 = scmp.ne.s32.totalorder %s108_s21, %s130_s1  ;;  %p136_p2 = scmp.lt.s32.totalorder %s130_s1, %s130_s1 }
   0x7   :  { %p137_p3 = por %p136_p2, %p135_p1 }
   0x9   :  { %p138_p4 = pnand %p137_p3, %p131_p0 }
  0xc5   :  { %v95_v5 = vpop.f32.mrf.mxu0 }
  0xc6   :  { %v96_v6 = vadd.f32 %v115_v4, %v95_v5 }
  0xc7   :  { %v126_v7 = vpop.f32.mrf.mxu0 }
  0xc8   :  { %100 = vst.msk [vmem:[#allocation2] sm:$0xff] %vm99_vm2, %v96_v6 }
  0xc9   :  { %141 = shalt.err (!%p138_p4)
}
  0xca   :  { %110 = dma.vmem_to_hbm [thread:$0]  %s108_s21, 128, %s193_s3, [#allocation3]  }
  0xcb   :  { %150 = dma.done.wait [#allocation3], 128  }
  0xcc   :  { %151 = vsyncadd [#allocation3], 4294967168 }
  0xcd   :  { %114 = vsyncpa [#allocation3], 1 }

// kernel: _forward.1
= control target key start
LH: loop header
LB: loop body
LE: loop exit
PB: predicated region body
PF: predicated region fallthrough
CT: control target
= control target key end

     0   :  { %v152_v1 = vmov 0.0   ;;  %vm153_vm0 = vmmov 0   ;;  %s190_s0 = inlined_call_operand.vmem [shape: f32[8,16], index: 0, kind: input, shape index: {}]   ;;  %s191_s1 = inlined_call_operand.vmem [shape: f32[16,24], index: 1, kind: input, shape index: {}]   ;;  %s192_s2 = inlined_call_operand.vmem [shape: f32[1,24], index: 2, kind: input, shape index: {}]   ;;  %s193_s3 = inlined_call_operand.hbm [shape: f32[8,24], index: 3, kind: output, shape index: {}]  }
   0x1   :  { %v17_v0 = vld [vmem:[%s191_s1 + $0x8] sm:$0xff]  ;;  %120 = vmatprep.subr.mxu0 %v152_v1  ;;  %v16_v2 = vld [vmem:[%s191_s1] sm:$0xff]  ;;  %124 = vmatprep.mubr.msk.f32.mxu0 %vm153_vm0, %v152_v1 }
   0x2   :  { %8 = vsyncpa [#allocation3], 0  ;;  %121 = vmatpush3.msra.mxu0 %v17_v0  ;;  %v15_v3 = vld [vmem:[%s190_s0] sm:$0xff]  ;;  %vm25_vm1 = vcmask 130048   ;;  %s154_s20 = smov [#allocation2]   ;;  %vm99_vm2 = vcmask 195584  }
   0x3   :  { %122 = vmatprep.subr.mxu0 %v152_v1  ;;  %v115_v4 = vld [vmem:[%s192_s2] ss:$0 sm:$0xff]  ;;  %s107_s21 = sshll.u32 %s154_s20, 4  ;;  %s108_s21 = int_to_ptr.vmem [resolvable:$true] %s107_s21 }
   0x4   :  { %123 = vmatpush3.msra.mxu0 %v16_v2  ;;  %s130_s1 = scalar_lea.vmem %s108_s21, 128  ;;  %p135_p1 = scmp.lt.s32.totalorder %s108_s21, %s108_s21 }
   0x5   :  { %125 = vmatmul.mubr.msk.f32.vlgmr.msra.gmra.mxu0 %vm25_vm1, %v15_v3  ;;  %p131_p0 = scmp.ne.s32.totalorder %s108_s21, %s130_s1  ;;  %p136_p2 = scmp.lt.s32.totalorder %s130_s1, %s130_s1 }
   0x7   :  { %p137_p3 = por %p136_p2, %p135_p1 }
   0x9   :  { %p138_p4 = pnand %p137_p3, %p131_p0 }
  0xc5   :  { %v95_v5 = vpop.f32.mrf.mxu0 }
  0xc6   :  { %v96_v6 = vadd.f32 %v115_v4, %v95_v5 }
  0xc7   :  { %v126_v7 = vpop.f32.mrf.mxu0 }
  0xc8   :  { %100 = vst.msk [vmem:[#allocation2] sm:$0xff] %vm99_vm2, %v96_v6 }
  0xc9   :  { %141 = shalt.err (!%p138_p4)
}
  0xca   :  { %110 = dma.vmem_to_hbm [thread:$0]  %s108_s21, 128, %s193_s3, [#allocation3]  }
  0xcb   :  { %150 = dma.done.wait [#allocation3], 128  }
  0xcc   :  { %151 = vsyncadd [#allocation3], 4294967168 }
  0xcd   :  { %114 = vsyncpa [#allocation3], 1 }

</bundles_post_ra>
